<compile_context>
chip_gen: v7x
topology: tpu7x:2x2x1
jax: 0.10.0
libtpu: 0.0.40
codegen_flags: <defaults>
</compile_context>

<pallas_src>
import jax
import jax.numpy as jnp
from jax.experimental import pallas as pl
from jax.experimental.pallas import tpu as pltpu

_MIB = 1024 * 1024
_VMEM_BUDGET = 48 * _MIB      # conservative: fits v7x's 64 MiB/TC with headroom
_VMEM_LIMIT_CAP = 56 * _MIB   # never ask for the full physical VMEM


# --------------------------------------------------------------------------
# Kernel 1: key / value 1x1 convolutions (channel matmuls), tiled over HW.
# --------------------------------------------------------------------------
def _kv_proj_kernel(x_ref, wkT_ref, bk_ref, wvT_ref, bv_ref, k_ref, v_ref):
    # x_ref: (1, C, T) f32   wkT: (Cqp, C) bf16   bk: (Cqp, 1) f32
    # wvT:   (C, C) bf16     bv:  (C, 1) f32
    x = x_ref[0].astype(jnp.bfloat16)                                   # [C, T]
    k = jnp.dot(wkT_ref[...], x, preferred_element_type=jnp.float32) + bk_ref[...]
    v = jnp.dot(wvT_ref[...], x, preferred_element_type=jnp.float32) + bv_ref[...]
    k_ref[0] = k.astype(k_ref.dtype)                                    # [Cqp, T] bf16
    v_ref[0] = v.astype(v_ref.dtype)                                    # [C,   T] bf16


# --------------------------------------------------------------------------
# Kernel 2: flash-style position attention + gamma residual.
# --------------------------------------------------------------------------
def _make_attn_kernel(tk, kv_resident, bf16_exp):
    def kernel(xq_ref, k_ref, v_ref, wqT_ref, bq_ref, gamma_ref, o_ref,
               q_scr, m_scr, l_scr, acc_scr):
        ki = pl.program_id(2)

        @pl.when(ki == 0)
        def _init():
            # Query projection: once per (batch, q-tile); stash in VMEM scratch.
            xq = xq_ref[0].astype(jnp.bfloat16)                         # [C, TQ]
            q = jnp.dot(wqT_ref[...], xq,
                        preferred_element_type=jnp.float32) + bq_ref[...]
            q_scr[...] = q.astype(q_scr.dtype)                          # [Cqp, TQ]
            m_scr[...] = jnp.full_like(m_scr, -jnp.inf)
            l_scr[...] = jnp.zeros_like(l_scr)
            acc_scr[...] = jnp.zeros_like(acc_scr)

        if kv_resident:
            # K/V block is the full per-batch [Cqp/C, HW] slab resident in
            # VMEM (re-DMA'd only when the batch index changes); slice the
            # current kv tile out of it.
            off = ki * tk
            if tk % 128 == 0:
                off = pl.multiple_of(off, 128)
            k = k_ref[0, :, pl.ds(off, tk)]                             # [Cqp, TK]
            v = v_ref[0, :, pl.ds(off, tk)]                             # [C,   TK]
        else:
            k = k_ref[0]                                                # [Cqp, TK]
            v = v_ref[0]                                                # [C,   TK]
        q = q_scr[...]                                                  # [Cqp, TQ]

        # s[kv, q] = sum_c k[c, kv] * q[c, q]  (== energy[q, kv], transposed).
        # Contraction on dim 0 of both operands -> no explicit .T / XLU copy.
        s = jax.lax.dot_general(
            k, q, dimension_numbers=(((0,), (0,)), ((), ())),
            preferred_element_type=jnp.float32)                         # [TK, TQ]

        # Online softmax over the KV grid axis; stats on the lane axis [1, TQ].
        m_prev = m_scr[...]
        m_new = jnp.maximum(m_prev, jnp.max(s, axis=0, keepdims=True))  # [1, TQ]
        alpha = jnp.exp(m_prev - m_new)                                 # [1, TQ]
        if bf16_exp:
            # bf16 EUP path (v6e/v7x): ~2x exp throughput, p already bf16 for
            # the PV matmul; running denominator still accumulated in f32.
            p = jnp.exp((s - m_new).astype(jnp.bfloat16))               # [TK, TQ]
            p_sum = jnp.sum(p.astype(jnp.float32), axis=0, keepdims=True)
        else:
            p_f32 = jnp.exp(s - m_new)                                  # [TK, TQ]
            p = p_f32.astype(jnp.bfloat16)
            p_sum = jnp.sum(p_f32, axis=0, keepdims=True)
        l_scr[...] = alpha * l_scr[...] + p_sum
        acc_scr[...] = alpha * acc_scr[...] + jnp.dot(
            v, p, preferred_element_type=jnp.float32)                   # [C, TQ]
        m_scr[...] = m_new

        @pl.when(ki == pl.num_programs(2) - 1)
        def _finalize():
            inv_l = pl.reciprocal(l_scr[...], approx=True)              # [1, TQ]
            gamma = gamma_ref[0, 0]
            out = gamma * (acc_scr[...] * inv_l) + xq_ref[0]            # [C, TQ]
            o_ref[0] = out.astype(o_ref.dtype)

    return kernel


# --------------------------------------------------------------------------
# Sizing helpers.
# --------------------------------------------------------------------------
def _pick_tile(hw, cap):
    for t in (2048, 1024, 512, 256, 128):
        if t <= cap and hw % t == 0:
            return t
    return hw


def _attn_vmem_bytes(C, Cqp, HW, tq, tk, kv_resident):
    """Rough VMEM footprint of kernel 2 (double-buffered inputs/outputs,
    scratch, and the compiler-materialized [TK,TQ] s/p temporaries)."""
    f4, b2 = 4, 2
    kv_block = (Cqp + C) * (HW if kv_resident else tk) * b2
    kv_bufs = 2 if kv_resident else 3          # tiled path uses Buffered(3)
    return (2 * C * tq * f4                    # x tile (in)
            + 2 * C * tq * f4                  # out tile
            + kv_bufs * kv_block               # K + V
            + 2 * (Cqp * C * b2 + Cqp * f4)    # Wq^T + bq
            + Cqp * tq * b2                    # q scratch
            + 2 * tq * f4                      # m, l scratch
            + C * tq * f4                      # acc scratch
            + 2 * tk * tq * f4)                # s / p temporaries


def _proj_vmem_bytes(C, Cqp, t1):
    f4, b2 = 4, 2
    return (2 * C * t1 * f4                    # x tile
            + 2 * (Cqp + C) * t1 * b2          # K + V out tiles
            + 2 * (Cqp * C * b2 + Cqp * f4 + C * C * b2 + C * f4))   # weights


def _supports_bf16_exp():
    """bf16 EUP exists on v6e / v7x; v5e and earlier should stay in f32."""
    try:
        kind = jax.devices()[0].device_kind.lower()
    except Exception:
        return False
    return ("v6" in kind) or ("v7" in kind)


# --------------------------------------------------------------------------
# Wrapper.
# --------------------------------------------------------------------------
def pam_forward(x_nchw, wq, bq, wk, bk, wv, bv, gamma, *,
                tq=None, tk=None, kv_resident=None, bf16_exp=None):
    """Position Attention Module forward.

    x_nchw: [B, C, H, W] float32
    wq/wk : [C, Cq], bq/bk: [Cq]   (the 1x1 convs as channel matmuls)
    wv    : [C, C],  bv   : [C]
    gamma : scalar
    Returns [B, C, H, W] float32.
    """
    B, C, H, W = x_nchw.shape
    HW = H * W
    Cq = wq.shape[1]

    # Pad the query/key channel dim only to the bf16 sublane multiple (16):
    # zero padding is exact for the energy, and 128-padding was pure waste.
    Cqp = -(-Cq // 16) * 16

    # Auto-size the attention tiles against the VMEM budget (v7x: 64 MiB/TC).
    if tq is None or tk is None:
        t_auto = _pick_tile(HW, 128)
        for cap in (1024, 512, 256, 128):
            t = _pick_tile(HW, cap)
            if _attn_vmem_bytes(C, Cqp, HW, t, t, False) <= _VMEM_BUDGET:
                t_auto = t
                break
        tq = t_auto if tq is None else tq
        tk = t_auto if tk is None else tk
    assert HW % tq == 0 and HW % tk == 0, "tile sizes must divide H*W"

    # Resident K/V per batch if it fits the budget (removes the n_q-fold
    # re-read of K/V); otherwise fall back to streaming kv tiles.
    if kv_resident is None:
        kv_resident = _attn_vmem_bytes(C, Cqp, HW, tq, tk, True) <= _VMEM_BUDGET
    attn_need = _attn_vmem_bytes(C, Cqp, HW, tq, tk, kv_resident)
    attn_vmem_limit = int(min(max(32 * _MIB, attn_need * 5 // 4), _VMEM_LIMIT_CAP))

    if bf16_exp is None:
        bf16_exp = _supports_bf16_exp()

    x_b = x_nchw.reshape(B, C, HW)          # pure reshape: no HBM transpose

    f32, bf16 = jnp.float32, jnp.bfloat16
    wqT = jnp.zeros((Cqp, C), bf16).at[:Cq, :].set(wq.T.astype(bf16))
    wkT = jnp.zeros((Cqp, C), bf16).at[:Cq, :].set(wk.T.astype(bf16))
    bqp = jnp.zeros((Cqp, 1), f32).at[:Cq, 0].set(bq.astype(f32))
    bkp = jnp.zeros((Cqp, 1), f32).at[:Cq, 0].set(bk.astype(f32))
    wvT = wv.T.astype(bf16)                                   # [C, C]
    bvp = bv.reshape(C, 1).astype(f32)
    g = jnp.reshape(gamma, (1, 1)).astype(f32)

    # ---- kernel 1: key / value 1x1 convs (HBM-bound -> big spatial tile) ----
    t1 = _pick_tile(HW, 128)
    for cap in (2048, 1024, 512, 256, 128):
        t = _pick_tile(HW, cap)
        if _proj_vmem_bytes(C, Cqp, t) <= _VMEM_BUDGET:
            t1 = t
            break
    proj_vmem_limit = int(min(max(32 * _MIB, _proj_vmem_bytes(C, Cqp, t1) * 5 // 4),
                              _VMEM_LIMIT_CAP))

    k_arr, v_arr = pl.pallas_call(
        _kv_proj_kernel,
        out_shape=(jax.ShapeDtypeStruct((B, Cqp, HW), bf16),
                   jax.ShapeDtypeStruct((B, C, HW), bf16)),
        grid_spec=pltpu.PrefetchScalarGridSpec(
            num_scalar_prefetch=0,
            grid=(B, HW // t1),
            in_specs=[
                pl.BlockSpec((1, C, t1), lambda b, i: (b, 0, i)),     # x
                pl.BlockSpec((Cqp, C), lambda b, i: (0, 0)),          # Wk^T
                pl.BlockSpec((Cqp, 1), lambda b, i: (0, 0)),          # bk
                pl.BlockSpec((C, C), lambda b, i: (0, 0)),            # Wv^T
                pl.BlockSpec((C, 1), lambda b, i: (0, 0)),            # bv
            ],
            out_specs=[
                pl.BlockSpec((1, Cqp, t1), lambda b, i: (b, 0, i)),   # K
                pl.BlockSpec((1, C, t1), lambda b, i: (b, 0, i)),     # V
            ],
        ),
        compiler_params=pltpu.CompilerParams(
            dimension_semantics=("parallel", "parallel"),
            vmem_limit_bytes=proj_vmem_limit),
    )(x_b, wkT, bkp, wvT, bvp)

    # ---- kernel 2: flash-style position attention + gamma residual ----
    n_q, n_k = HW // tq, HW // tk

    if kv_resident:
        # Full per-batch K/V slab; re-DMA'd only when the batch index changes.
        k_spec = pl.BlockSpec((1, Cqp, HW), lambda b, qi, ki: (b, 0, 0))
        v_spec = pl.BlockSpec((1, C, HW), lambda b, qi, ki: (b, 0, 0))
    else:
        # Streaming fallback for very large HW; triple-buffer the kv tiles so
        # DMA jitter doesn't starve the MXU (helps v7x where DMA~compute).
        k_spec = pl.BlockSpec((1, Cqp, tk), lambda b, qi, ki: (b, 0, ki),
                              pipeline_mode=pl.Buffered(3))
        v_spec = pl.BlockSpec((1, C, tk), lambda b, qi, ki: (b, 0, ki),
                              pipeline_mode=pl.Buffered(3))

    kv_read_bytes = HW * (Cqp + C) * 2 * (1 if kv_resident else n_q)
    cost = pl.CostEstimate(
        flops=int(2 * B * (HW * Cqp * C + HW * HW * Cqp + HW * HW * C)),
        transcendentals=int(B * HW * HW),
        bytes_accessed=int(B * (2 * HW * C * 4 + kv_read_bytes)
                           + Cqp * C * 2 + Cqp * 4),
    )

    out = pl.pallas_call(
        _make_attn_kernel(tk, kv_resident, bf16_exp),
        out_shape=jax.ShapeDtypeStruct((B, C, HW), x_b.dtype),
        grid_spec=pltpu.PrefetchScalarGridSpec(
            num_scalar_prefetch=0,
            grid=(B, n_q, n_k),
            in_specs=[
                pl.BlockSpec((1, C, tq), lambda b, qi, ki: (b, 0, qi)),    # x (q tile + residual)
                k_spec,                                                    # K
                v_spec,                                                    # V
                pl.BlockSpec((Cqp, C), lambda b, qi, ki: (0, 0)),          # Wq^T
                pl.BlockSpec((Cqp, 1), lambda b, qi, ki: (0, 0)),          # bq
                pl.BlockSpec(memory_space=pltpu.MemorySpace.SMEM),         # gamma
            ],
            out_specs=pl.BlockSpec((1, C, tq), lambda b, qi, ki: (b, 0, qi)),
            scratch_shapes=[
                pltpu.VMEM((Cqp, tq), bf16),   # projected query tile
                pltpu.VMEM((1, tq), f32),      # running max
                pltpu.VMEM((1, tq), f32),      # running denominator
                pltpu.VMEM((C, tq), f32),      # output accumulator
            ],
        ),
        compiler_params=pltpu.CompilerParams(
            # B * n_q parallel steps shard across v7x's two TensorCores.
            dimension_semantics=("parallel", "parallel", "arbitrary"),
            vmem_limit_bytes=attn_vmem_limit),
        cost_estimate=cost,
    )(x_b, k_arr, v_arr, wqT, bqp, g)

    return out.reshape(B, C, H, W)


# --------------------------------------------------------------------------
# Reference + test.
# --------------------------------------------------------------------------
def _reference(x_nchw, wq, bq, wk, bk, wv, bv, gamma):
    """Plain-JAX (f32) reference mirroring the PyTorch forward exactly."""
    B, C, H, W = x_nchw.shape
    HW = H * W
    x_flat = jnp.transpose(x_nchw, (0, 2, 3, 1)).reshape(B, HW, C)
    q = x_flat @ wq + bq
    k = x_flat @ wk + bk
    v = x_flat @ wv + bv
    energy = jnp.einsum("bic,bjc->bij", q, k)
    attn = jax.nn.softmax(energy, axis=-1)
    out = jnp.einsum("bij,bjc->bic", attn, v)
    out = gamma * out + x_flat
    return jnp.transpose(out.reshape(B, H, W, C), (0, 3, 1, 2))


if __name__ == "__main__":
    # in_dim must be >= 8 so that in_dim // 8 >= 1 for the query/key convs.
    B, C, H, W = 2, 16, 16, 16
    Cq = C // 8

    key = jax.random.PRNGKey(0)
    kx, kq, kk, kv_, kbq, kbk, kbv = jax.random.split(key, 7)

    x = jax.random.normal(kx, (B, C, H, W), dtype=jnp.float32)

    # PyTorch conv weight is [out, in, 1, 1]; stored here as [in, out].
    bound = 1.0 / jnp.sqrt(jnp.float32(C))
    wq = jax.random.uniform(kq, (C, Cq), jnp.float32, -bound, bound)
    wk = jax.random.uniform(kk, (C, Cq), jnp.float32, -bound, bound)
    wv = jax.random.uniform(kv_, (C, C), jnp.float32, -bound, bound)
    bq = jax.random.uniform(kbq, (Cq,), jnp.float32, -bound, bound)
    bk = jax.random.uniform(kbk, (Cq,), jnp.float32, -bound, bound)
    bv = jax.random.uniform(kbv, (C,), jnp.float32, -bound, bound)
    # gamma is initialized to 0 in the PyTorch __init__; use a nonzero value
    # so the attention path actually contributes to the output.
    gamma = jnp.float32(0.5)

    ref = jax.block_until_ready(_reference(x, wq, bq, wk, bk, wv, bv, gamma))

    # Path 1 (default for these shapes): VMEM-resident K/V, tq = tk = 128 with
    # HW = 256 -> grid (2, 2, 2): exercises query tiling and the multi-step
    # online-softmax accumulation over in-VMEM kv slices.
    out_res = jax.block_until_ready(
        pam_forward(x, wq, bq, wk, bk, wv, bv, gamma, tq=128, tk=128))
    assert out_res.shape == (B, C, H, W)
    assert jnp.allclose(out_res, ref, rtol=2e-2, atol=2e-2), (
        "resident-KV mismatch vs reference: max abs err = "
        f"{float(jnp.max(jnp.abs(out_res - ref)))}")

    # Path 2: the streaming (tiled-KV) fallback that large HW shapes would use.
    out_tiled = jax.block_until_ready(
        pam_forward(x, wq, bq, wk, bk, wv, bv, gamma,
                    tq=128, tk=128, kv_resident=False))
    assert jnp.allclose(out_tiled, ref, rtol=2e-2, atol=2e-2), (
        "tiled-KV mismatch vs reference: max abs err = "
        f"{float(jnp.max(jnp.abs(out_tiled - ref)))}")

    print("KERNEL_OK")
</pallas_src>

<mosaic_0001>
module attributes {stable_mosaic.version = 11 : i64} {
  func.func @_kv_proj_kernel(%arg0: i32, %arg1: i32, %arg2: memref<1x16x256xf32, #tpu.memory_space<vmem>>, %arg3: memref<16x16xbf16, #tpu.memory_space<vmem>>, %arg4: memref<16x1xf32, #tpu.memory_space<vmem>>, %arg5: memref<16x16xbf16, #tpu.memory_space<vmem>>, %arg6: memref<16x1xf32, #tpu.memory_space<vmem>>, %arg7: memref<1x16x256xbf16, #tpu.memory_space<vmem>>, %arg8: memref<1x16x256xbf16, #tpu.memory_space<vmem>>) attributes {dimension_semantics = [#tpu.dimension_semantics<parallel>, #tpu.dimension_semantics<parallel>], iteration_bounds = array<i64: 2, 1>, scalar_prefetch = 0 : i64, scratch_operands = 0 : i64, tpu.core_type = #tpu.core_type<tc>, window_params = [{transform_indices = @transform_0, window_bounds = array<i64: 1, 16, 256>}, {pipeline_mode = #tpu.pipeline_mode<synchronous>, transform_indices = @transform_1, window_bounds = array<i64: 16, 16>}, {pipeline_mode = #tpu.pipeline_mode<synchronous>, transform_indices = @transform_2, window_bounds = array<i64: 16, 1>}, {pipeline_mode = #tpu.pipeline_mode<synchronous>, transform_indices = @transform_3, window_bounds = array<i64: 16, 16>}, {pipeline_mode = #tpu.pipeline_mode<synchronous>, transform_indices = @transform_4, window_bounds = array<i64: 16, 1>}, {transform_indices = @transform_5, window_bounds = array<i64: 1, 16, 256>}, {transform_indices = @transform_6, window_bounds = array<i64: 1, 16, 256>}]} {
    %c0 = arith.constant 0 : index
    %c0_0 = arith.constant 0 : index
    %c0_1 = arith.constant 0 : index
    %0 = vector.load %arg2[%c0, %c0_0, %c0_1] : memref<1x16x256xf32, #tpu.memory_space<vmem>>, vector<1x16x256xf32>
    %1 = vector.shape_cast %0 : vector<1x16x256xf32> to vector<16x256xf32>
    %2 = arith.truncf %1 : vector<16x256xf32> to vector<16x256xbf16>
    %c0_2 = arith.constant 0 : index
    %c0_3 = arith.constant 0 : index
    %3 = vector.load %arg3[%c0_2, %c0_3] : memref<16x16xbf16, #tpu.memory_space<vmem>>, vector<16x16xbf16>
    %cst = arith.constant dense<0.000000e+00> : vector<16x256xf32>
    %4 = tpu.matmul %3, %2, %cst {dimension_numbers = #tpu.dot_dimension_numbers<[1], [0], [0], [1], [0, 0, 1, 1], [], []>} : vector<16x16xbf16>, vector<16x256xbf16>, vector<16x256xf32> -> vector<16x256xf32>
    %c0_4 = arith.constant 0 : index
    %c0_5 = arith.constant 0 : index
    %5 = vector.load %arg4[%c0_4, %c0_5] : memref<16x1xf32, #tpu.memory_space<vmem>>, vector<16x1xf32>
    %6 = vector.broadcast %5 : vector<16x1xf32> to vector<16x256xf32>
    %7 = arith.addf %4, %6 : vector<16x256xf32>
    %c0_6 = arith.constant 0 : index
    %c0_7 = arith.constant 0 : index
    %8 = vector.load %arg5[%c0_6, %c0_7] : memref<16x16xbf16, #tpu.memory_space<vmem>>, vector<16x16xbf16>
    %cst_8 = arith.constant dense<0.000000e+00> : vector<16x256xf32>
    %9 = tpu.matmul %8, %2, %cst_8 {dimension_numbers = #tpu.dot_dimension_numbers<[1], [0], [0], [1], [0, 0, 1, 1], [], []>} : vector<16x16xbf16>, vector<16x256xbf16>, vector<16x256xf32> -> vector<16x256xf32>
    %c0_9 = arith.constant 0 : index
    %c0_10 = arith.constant 0 : index
    %10 = vector.load %arg6[%c0_9, %c0_10] : memref<16x1xf32, #tpu.memory_space<vmem>>, vector<16x1xf32>
    %11 = vector.broadcast %10 : vector<16x1xf32> to vector<16x256xf32>
    %12 = arith.addf %9, %11 : vector<16x256xf32>
    %13 = arith.truncf %7 : vector<16x256xf32> to vector<16x256xbf16>
    %c0_11 = arith.constant 0 : index
    %c0_12 = arith.constant 0 : index
    %c0_13 = arith.constant 0 : index
    %14 = vector.load %arg7[%c0_11, %c0_12, %c0_13] : memref<1x16x256xbf16, #tpu.memory_space<vmem>>, vector<1x16x256xbf16>
    %15 = vector.shape_cast %14 : vector<1x16x256xbf16> to vector<16x256xbf16>
    %16 = vector.shape_cast %13 : vector<16x256xbf16> to vector<1x16x256xbf16>
    tpu.vector_store %arg7[%c0_11, %c0_12, %c0_13], %16 {strides = array<i32>} : memref<1x16x256xbf16, #tpu.memory_space<vmem>>, vector<1x16x256xbf16>,
    %17 = arith.truncf %12 : vector<16x256xf32> to vector<16x256xbf16>
    %c0_14 = arith.constant 0 : index
    %c0_15 = arith.constant 0 : index
    %c0_16 = arith.constant 0 : index
    %18 = vector.load %arg8[%c0_14, %c0_15, %c0_16] : memref<1x16x256xbf16, #tpu.memory_space<vmem>>, vector<1x16x256xbf16>
    %19 = vector.shape_cast %18 : vector<1x16x256xbf16> to vector<16x256xbf16>
    %20 = vector.shape_cast %17 : vector<16x256xbf16> to vector<1x16x256xbf16>
    tpu.vector_store %arg8[%c0_14, %c0_15, %c0_16], %20 {strides = array<i32>} : memref<1x16x256xbf16, #tpu.memory_space<vmem>>, vector<1x16x256xbf16>,
    return
  }
  func.func @transform_0(%arg0: i32, %arg1: i32) -> (i32, i32, i32) {
    %c0_i32 = arith.constant 0 : i32
    %c0_i32_0 = arith.constant 0 : i32
    return %arg0, %c0_i32, %arg1 : i32, i32, i32
  }
  func.func @transform_1(%arg0: i32, %arg1: i32) -> (i32, i32) {
    %c0_i32 = arith.constant 0 : i32
    %c0_i32_0 = arith.constant 0 : i32
    %c0_i32_1 = arith.constant 0 : i32
    return %c0_i32, %c0_i32_0 : i32, i32
  }
  func.func @transform_2(%arg0: i32, %arg1: i32) -> (i32, i32) {
    %c0_i32 = arith.constant 0 : i32
    %c0_i32_0 = arith.constant 0 : i32
    %c0_i32_1 = arith.constant 0 : i32
    return %c0_i32, %c0_i32_0 : i32, i32
  }
  func.func @transform_3(%arg0: i32, %arg1: i32) -> (i32, i32) {
    %c0_i32 = arith.constant 0 : i32
    %c0_i32_0 = arith.constant 0 : i32
    %c0_i32_1 = arith.constant 0 : i32
    return %c0_i32, %c0_i32_0 : i32, i32
  }
  func.func @transform_4(%arg0: i32, %arg1: i32) -> (i32, i32) {
    %c0_i32 = arith.constant 0 : i32
    %c0_i32_0 = arith.constant 0 : i32
    %c0_i32_1 = arith.constant 0 : i32
    return %c0_i32, %c0_i32_0 : i32, i32
  }
  func.func @transform_5(%arg0: i32, %arg1: i32) -> (i32, i32, i32) {
    %c0_i32 = arith.constant 0 : i32
    %c0_i32_0 = arith.constant 0 : i32
    return %arg0, %c0_i32, %arg1 : i32, i32, i32
  }
  func.func @transform_6(%arg0: i32, %arg1: i32) -> (i32, i32, i32) {
    %c0_i32 = arith.constant 0 : i32
    %c0_i32_0 = arith.constant 0 : i32
    return %arg0, %c0_i32, %arg1 : i32, i32, i32
  }
}

</mosaic_0001>

<bundles_post_ra>
// kernel: tpu_custom_call.1
= control target key start
LH: loop header
LB: loop body
LE: loop exit
PB: predicated region body
PF: predicated region fallthrough
CT: control target
= control target key end

     0   :  { %12 = vsyncpa [#allocation3], 0  ;;  %s1161_s0 = inlined_call_operand.hbm [shape: f32[2,16,256], index: 0, kind: input, shape index: {}]   ;;  %s1162_s1 = inlined_call_operand.vmem [shape: bf16[16,16], index: 1, kind: input, shape index: {}]   ;;  %s1163_s2 = inlined_call_operand.vmem [shape: f32[16,1], index: 2, kind: input, shape index: {}]   ;;  %s1164_s3 = inlined_call_operand.vmem [shape: bf16[16,16], index: 3, kind: input, shape index: {}]   ;;  %s1165_s4 = inlined_call_operand.vmem [shape: f32[16,1], index: 4, kind: input, shape index: {}]   ;;  %s1166_s5 = inlined_call_operand.hbm [shape: bf16[2,16,256], index: 5, kind: output, shape index: {0}]   ;;  %s1167_s6 = inlined_call_operand.hbm [shape: bf16[2,16,256], index: 6, kind: output, shape index: {1}]  }
   0x1   :  { %14 = vsyncpa [#allocation3 + $0x1], 0 }
   0x2   :  { %15 = vsyncpa [#allocation4], 0 }
   0x3   :  { %17 = vsyncpa [#allocation4 + $0x1], 0 }
   0x4   :  { %18 = vsyncpa [#allocation7], 0 }
   0x5   :  { %20 = vsyncpa [#allocation7 + $0x1], 0  ;;  %s930_s21 = smov 0   ;;  %s932_s22 = smov 0  }
   0x6   :  { %s934_s23 = smov 0   ;;  %s936_s24 = smov 0  }
   0x7   :  { %s938_s25 = smov 0   ;;  %s940_s26 = smov 0  }
   0x8 LB: > { %s631_s27 = sadd.s32 4294967295, %s885_s26   ;;  %s632_s28 = sadd.s32 4294967294, %s885_s26   ;;  %s885_s26 = sphi %s940_s26, %s26_s26   ;;  %s881_s25 = sphi %s938_s25, %s1182_s25   ;;  %s877_s24 = sphi %s936_s24, %s1181_s24   ;;  %s873_s23 = sphi %s934_s23, %s1180_s23   ;;  %s869_s22 = sphi %s932_s22, %s1179_s22   ;;  %s865_s21 = sphi %s930_s21, %s1178_s21  }
   0x9   : > { %s38_s29 = sadd.s32 1, %s881_s25  ;;  %s47_s30 = sadd.s32 1, %s873_s23 }
   0xa   : > { %p40_p0 = scmp.ge.s32.totalorder %s38_s29, 2  ;;  %p54_p1 = scmp.ne.s32.totalorder %s873_s23, %s869_s22 }
   0xb   : > { %p55_p2 = scmp.eq.s32.totalorder %s885_s26, 0  ;;  %p60_p3 = scmp.ne.s32.totalorder %s869_s22, %s865_s21 }
   0xc   : > { %s1184_s29 = smov (%p40_p0, %s38_s29), 0  ;;  %p61_p5 = scmp.eq.s32.totalorder %s631_s27, 0 }
   0xd   : > { %p971_p4 = por %p55_p2, %p54_p1  ;;  %s42_s8 = ssub.s32 %s881_s25, %s1184_s29 }
   0xe   : > { %p170_p6 = scmp.eq.s32.totalorder %s631_s27, 1  ;;  %p45_p7 = scmp.eq.s32.totalorder %s42_s8, 0 }
   0xf   : > { %p977_p8 = por %p61_p5, %p60_p3  ;;  %p176_p10 = scmp.eq.s32.totalorder %s632_s28, 1 }
  0x10   : > { %p981_p9 = por %p170_p6, %p54_p1  ;;  %p682_p13 = scmp.lt.s32.totalorder %s885_s26, 2 }
  0x11   : > { %s986_s11 = scalar_select %p45_p7, %s873_s23, %s47_s30  }
  0x12   : > { %s1171_s10 = scalar_select %p981_p9, 1, 0 }
  0x13   : > { %p988_p11 = por %p176_p10, %p60_p3  ;;  %s236_s13 = sand.u32 1, %s873_s23  }
  0x14   : > { %s635_s14 = sshll.u32 %s236_s13, 5  ;;  %s658_s15 = sshll.u32 %s881_s25, 9 }
  0x15   : > { %s1172_s12 = scalar_select %p988_p11, 1, 0 }
  0x16   : > { %s999_s18 = scalar_lea.hbm %s1161_s0, %s658_s15  ;;  %s240_s19 = scalar_lea.vmem [#allocation2], %s635_s14 }
  0x17   : > { %s249_s20 = sshll.u32 %s240_s19, 4  ;;  %p1005_p0 = pnand %p682_p13, %p971_p4  ;;  %s1001_s20 = int_to_ptr.vmem [resolvable:$true] %s249_s20 }
  0x18   : > { %s1010_s28 = scalar_lea.sflag [#allocation3], %s236_s13  ;;  %s741_s30 = scalar_lea.hbm %s999_s18, 512 }
  0x19   : > { %p742_p2 = scmp.ne.s32.totalorder %s999_s18, %s741_s30  ;;  %p743_p3 = pneg %p1005_p0 }
  0x1a   : > { %s746_s7 = scalar_lea.hbm %s1161_s0, 1024  ;;  %p747_p4 = scmp.lt.u32.totalorder %s999_s18, %s1161_s0 }
  0x1b   : > { %p744_p5 = pnand %p743_p3, %p742_p2  ;;  %p748_p7 = scmp.lt.u32.totalorder %s746_s7, %s741_s30 }
  0x1c   : > { %p750_p13 = scmp.lt.u32.totalorder %s741_s30, %s999_s18 }
  0x1d   : > { %p745_p6 = pneg %p744_p5  ;;  %p749_p10 = por %p748_p7, %p747_p4 }
  0x1f   : > { %p751_p12 = por %p750_p13, %p749_p10 }
  0x21   : > { %p752_p1 = pnand %p751_p12, %p745_p6 }
  0x23   : > { %755 = shalt.err (!%p752_p1)
}
  0x24   : > { %s756_s13 = scalar_lea.vmem %s1001_s20, 512  ;;  %s887_s17 = smov [#allocation2]  }
  0x25   : > { %p757_p2 = scmp.ne.s32.totalorder %s1001_s20, %s756_s13  ;;  %s761_s19 = sshll.u32 %s887_s17, 4  ;;  %s762_s19 = int_to_ptr.vmem [resolvable:$false] %s761_s19 }
  0x26   : > { %s763_s8 = scalar_lea.vmem %s762_s19, 1024  ;;  %p764_p9 = scmp.lt.s32.totalorder %s1001_s20, %s762_s19 }
  0x27   : > { %p759_p5 = pnand %p757_p2, %p743_p3  ;;  %p765_p4 = scmp.lt.s32.totalorder %s763_s8, %s756_s13 }
  0x29   : > { %p760_p11 = pneg %p759_p5  ;;  %p766_p7 = por %p765_p4, %p764_p9 }
  0x2b   : > { %p767_p10 = pnand %p766_p7, %p760_p11 }
  0x2d   : > { %770 = shalt.err (!%p767_p10)
}
  0x2e   : > { %s888_s30 = smov 256   ;;  %s889_s14 = smov 16  }
  0x2f   : > { %674 = dma.hbm_to_vmem [thread:$0]  (!%p1005_p0), %s999_s18, 512, %s1001_s20, %s1010_s28, %s888_s30, %s888_s30, %s889_s14  }
  0x30   : > { %p257_p12 = scmp.lt.s32.totalorder %s885_s26, 3  ;;  %p1174_p1 = scmp.ge.s32.totalorder %s885_s26, 1 }
  0x32   : > { %p258_p3 = pnand %p1174_p1, %p257_p12 }
  0x33   : > { %s1042_s7 = sand.u32 (!%p258_p3), 1, %s869_s22  }
  0x34   : > { %261 = sbr.rel (%p258_p3) target bundleno = 324 (0x144), region = 40  ;;  %s639_s15 = sshll.u32 (!%p258_p3), %s1042_s7, 5 }
  0x35   : > { %s264_s16 = scalar_lea.sflag (!%p258_p3), [#allocation3], %s1042_s7  ;;  %s267_s13 = scalar_lea.vmem (!%p258_p3), [#allocation2], %s639_s15 }
  0x3b   : > { %852 = dma.done.wait (%p977_p8), %s264_s16, 512  }
  0x3c   : > { %854 = vsyncadd (%p977_p8), %s264_s16, 4294966784  ;;  %v890_v0 = vmov 0   ;;  %v306_v1 = vld [vmem:[%s267_s13 + $0x8] sm:$0xff]  ;;  %v308_v2 = vld [vmem:[%s267_s13 + $0x18] sm:$0xff]  ;;  %vm330_vm0 = vcmask 130048   ;;  %s663_s28 = sshll.u32 %s877_s24, 8 }
  0x3d   : > { %366 = vmatprep.mubr.bf16.mxu0 %v890_v0  ;;  %431 = vmatprep.mubr.bf16.mxu1 %v890_v0  ;;  %v305_v3 = vld [vmem:[%s267_s13] sm:$0xff]  ;;  %v310_v4 = vpack.c.bf16 %v308_v2, %v306_v1  ;;  %v307_v5 = vld [vmem:[%s267_s13 + $0x10] sm:$0xff]  ;;  %v380_v11 = vld [vmem:[%s1165_s4 + $0x8] sm:$0xff]  ;;  %s640_s13 = sshll.u32 %s1042_s7, 4  ;;  %s1077_s24 = scalar_lea.hbm %s1166_s5, %s663_s28 }
  0x3e   : > { %738 = vset.pattern.permute.xlu1 %v890_v0  ;;  %737 = vset.pattern.permute.xlu0 %v890_v0  ;;  %v309_v6 = vpack.c.bf16 %v307_v5, %v305_v3  ;;  %v739_v7 = vld [vmem:[%s1162_s1] sm:$0xff]   ;;  %v314_v12 = vld [vmem:[%s1163_s2 + $0x8] sm:$0xff]  ;;  %s293_s18 = scalar_lea.vmem [#allocation5], %s640_s13  ;;  %s300_s27 = scalar_lea.vmem [#allocation6], %s640_s13 }
  0x3f   : > { %334 = vmatprep.subr.bf16.mxu0 %v310_v4  ;;  %399 = vmatprep.subr.bf16.mxu1 %v310_v4  ;;  %v740_v8 = vld [vmem:[%s1164_s3] sm:$0xff]   ;;  %s491_s20 = sshll.u32 %s293_s18, 4  ;;  %s509_s9 = sshll.u32 %s300_s27, 4  ;;  %s1070_s20 = int_to_ptr.vmem [resolvable:$true] %s491_s20  ;;  %s1072_s9 = int_to_ptr.vmem [resolvable:$true] %s509_s9 }
  0x40   : > { %v379_v9 = vld [vmem:[%s1165_s4] sm:$0xff]  ;;  %335 = vmatpush1.bf16.msra.mxu0 %v309_v6  ;;  %400 = vmatpush1.bf16.msra.mxu1 %v309_v6  ;;  %s1082_s14 = scalar_lea.hbm %s1167_s6, %s663_s28  ;;  %s471_s15 = scalar_lea.sflag [#allocation4], %s1042_s7 }
  0x41   : > { %v313_v10 = vld [vmem:[%s1163_s2] sm:$0xff]  ;;  %383 = vperm.xlu1 %738, %v379_v9   ;;  %s771_s16 = scalar_lea.vmem %s1070_s20, 256  ;;  %p1175_p9 = scmp.ne.s32.totalorder %s1171_s10, 0 }
  0x42   : > { %317 = vperm.xlu0 %737, %v313_v10   ;;  %p772_p8 = scmp.ne.s32.totalorder %s1070_s20, %s771_s16  ;;  %s891_s13 = smov [#allocation5]  }
  0x43   : > { %643 = vmatmul.mubr.msk.bf16.vlgmr.msra.gmra.mrb[0].mxu0 %vm330_vm0, %v739_v7  ;;  %645 = vmatmul.mubr.msk.bf16.vlgmr.msra.gmra.mrb[0].mxu1 %vm330_vm0, %v740_v8  ;;  %s775_s17 = sshll.u32 %s891_s13, 4  ;;  %s776_s17 = int_to_ptr.vmem [resolvable:$false] %s775_s17 }
  0x44   : > { %p773_p11 = pnand %p772_p8, %p1175_p9  ;;  %s777_s19 = scalar_lea.vmem %s776_s17, 512 }
  0x45   : > { %388 = vperm.xlu1 %738, %v380_v11   ;;  %p778_p6 = scmp.lt.s32.totalorder %s1070_s20, %s776_s17  ;;  %p779_p13 = scmp.lt.s32.totalorder %s777_s19, %s771_s16 }
  0x46   : > { %322 = vperm.xlu0 %737, %v314_v12   ;;  %p774_p0 = pneg %p773_p11 }
  0x47   : > { %p780_p2 = por %p779_p13, %p778_p6 }
  0x49   : > { %p781_p5 = pnand %p780_p2, %p774_p0 }
  0xc0   : > { %v384_v13 = vpop.permute.xlu1 %383 }
  0xc1   : > { %v318_v14 = vpop.permute.xlu0 %317 }
  0xc4   : > { %v389_v15 = vpop.permute.xlu1 %388 }
  0xc5   : > { %v323_v16 = vpop.permute.xlu0 %322 }
 0x116   : > { %v368_v17 = vpop.f32.mrb[0].mxu0  ;;  %v433_v18 = vpop.f32.mrb[0].mxu1 }
 0x117   : > { %v369_v19 = vadd.f32 %v368_v17, %v318_v14  ;;  %v434_v20 = vadd.f32 %v433_v18, %v384_v13  ;;  %v370_v21 = vpop.f32.mrb[1].mxu0  ;;  %v435_v22 = vpop.f32.mrb[1].mxu1 }
 0x118   : > { %v371_v23 = vadd.f32 %v370_v21, %v318_v14  ;;  %v436_v24 = vadd.f32 %v435_v22, %v384_v13  ;;  %v372_v25 = vpop.f32.mrb[2].mxu0  ;;  %v437_v26 = vpop.f32.mrb[2].mxu1 }
 0x119   : > { %v373_v27 = vadd.f32 %v372_v25, %v323_v16  ;;  %v438_v28 = vadd.f32 %v437_v26, %v389_v15  ;;  %v374_v29 = vpop.f32.mrb[3].mxu0  ;;  %v439_v30 = vpop.f32.mrb[3].mxu1 }
 0x11a   : > { %v659_v31 = vpack.c.bf16 %v371_v23, %v369_v19  ;;  %v661_v32 = vpack.c.bf16 %v436_v24, %v434_v20  ;;  %v375_v33 = vadd.f32 %v374_v29, %v323_v16  ;;  %v440_v34 = vadd.f32 %v439_v30, %v389_v15 }
 0x11c   : > { %454 = vst [vmem:[%s293_s18] sm:$0xff] %v659_v31  ;;  %468 = vst [vmem:[%s300_s27] sm:$0xff] %v661_v32  ;;  %v660_v35 = vpack.c.bf16 %v375_v33, %v373_v27  ;;  %v662_v36 = vpack.c.bf16 %v440_v34, %v438_v28 }
 0x11e   : > { %455 = vst [vmem:[%s293_s18 + $0x8] sm:$0xff] %v660_v35  ;;  %469 = vst [vmem:[%s300_s27 + $0x8] sm:$0xff] %v662_v36 }
 0x11f   : > { %784 = shalt.err (!%p781_p5)
}
 0x120   : > { %s785_s18 = scalar_lea.hbm %s1077_s24, 256  ;;  %s789_s8 = scalar_lea.hbm %s1166_s5, 512 }
 0x121   : > { %p786_p4 = scmp.ne.s32.totalorder %s1077_s24, %s785_s18  ;;  %p790_p12 = scmp.lt.u32.totalorder %s1077_s24, %s1166_s5 }
 0x122   : > { %p791_p1 = scmp.lt.u32.totalorder %s789_s8, %s785_s18  ;;  %p793_p8 = scmp.lt.u32.totalorder %s785_s18, %s1077_s24 }
 0x123   : > { %p787_p7 = pnand %p786_p4, %p1175_p9 }
 0x124   : > { %p792_p3 = por %p791_p1, %p790_p12 }
 0x125   : > { %p788_p10 = pneg %p787_p7 }
 0x126   : > { %p794_p11 = por %p793_p8, %p792_p3 }
 0x128   : > { %p795_p0 = pnand %p794_p11, %p788_p10 }
 0x12a   : > { %798 = shalt.err (!%p795_p0)
}
 0x12b   : > { %s892_s16 = smov 128   ;;  %s893_s17 = smov 8  }
 0x12c   : > { %667 = dma.vmem_to_hbm [thread:$0]  (%p1175_p9), %s1070_s20, 256, %s1077_s24, %s471_s15, %s892_s16, %s892_s16, %s893_s17  }
 0x12d   : > { %s476_s19 = scalar_lea.sflag [#allocation7], %s1042_s7  ;;  %s799_s18 = scalar_lea.vmem %s1072_s9, 256 }
 0x12e   : > { %p800_p6 = scmp.ne.s32.totalorder %s1072_s9, %s799_s18  ;;  %s894_s27 = smov [#allocation6]  }
 0x12f   : > { %s803_s28 = sshll.u32 %s894_s27, 4  ;;  %s804_s28 = int_to_ptr.vmem [resolvable:$false] %s803_s28 }
 0x130   : > { %p801_p13 = pnand %p800_p6, %p1175_p9  ;;  %s805_s8 = scalar_lea.vmem %s804_s28, 512 }
 0x131   : > { %p806_p5 = scmp.lt.s32.totalorder %s1072_s9, %s804_s28  ;;  %p807_p4 = scmp.lt.s32.totalorder %s805_s8, %s799_s18 }
 0x132   : > { %p802_p2 = pneg %p801_p13 }
 0x133   : > { %p808_p7 = por %p807_p4, %p806_p5 }
 0x135   : > { %p809_p10 = pnand %p808_p7, %p802_p2 }
 0x137   : > { %812 = shalt.err (!%p809_p10)
}
 0x138   : > { %s813_s20 = scalar_lea.hbm %s1082_s14, 256  ;;  %s817_s30 = scalar_lea.hbm %s1167_s6, 512 }
 0x139   : > { %p814_p12 = scmp.ne.s32.totalorder %s1082_s14, %s813_s20  ;;  %p818_p8 = scmp.lt.u32.totalorder %s1082_s14, %s1167_s6 }
 0x13a   : > { %p819_p11 = scmp.lt.u32.totalorder %s817_s30, %s813_s20  ;;  %p821_p6 = scmp.lt.u32.totalorder %s813_s20, %s1082_s14 }
 0x13b   : > { %p815_p1 = pnand %p814_p12, %p1175_p9 }
 0x13c   : > { %p820_p0 = por %p819_p11, %p818_p8 }
 0x13d   : > { %p816_p3 = pneg %p815_p1 }
 0x13e   : > { %p822_p13 = por %p821_p6, %p820_p0 }
 0x140   : > { %p823_p2 = pnand %p822_p13, %p816_p3 }
 0x142   : > { %826 = shalt.err (!%p823_p2)
}
 0x143   : > { %668 = dma.vmem_to_hbm [thread:$0]  (%p1175_p9), %s1072_s9, 256, %s1082_s14, %s476_s19, %s892_s16, %s892_s16, %s893_s17  }
 0x144 PF: > { %s524_s18 = sand.u32 1, %s865_s21   ;;  %p1176_p5 = scmp.ne.s32.totalorder %s1172_s12, 0 }
 0x145   : > { %p1177_p4 = scmp.ge.s32.totalorder %s885_s26, 2  ;;  %s525_s28 = scalar_lea.sflag [#allocation4], %s524_s18 }
 0x147   : > { %p676_p7 = pnand %p1177_p4, %p1176_p5 }
 0x149   : > { %856 = dma.done.wait (!%p676_p7), %s525_s28, 256  }
 0x14a   : > { %858 = vsyncadd (!%p676_p7), %s525_s28, 4294967040  ;;  %s534_s10 = scalar_lea.sflag [#allocation7], %s524_s18 }
 0x14b   : > { %860 = dma.done.wait (!%p676_p7), %s534_s10, 256  }
 0x14c   : > { %862 = vsyncadd (!%p676_p7), %s534_s10, 4294967040  ;;  %s26_s26 = sadd.s32 1, %s885_s26   ;;  %s1178_s21 = smov %s869_s22 }
 0x14d   : > { %p23_p10 = scmp.ge.s32.totalorder %s26_s26, 4   ;;  %s1179_s22 = smov %s873_s23 }
 0x14e   : > { %s1180_s23 = smov %s986_s11  ;;  %s1181_s24 = smov %s881_s25 }
 0x14f   : > { %s1182_s25 = smov %s1184_s29  ;;  %25 = sbr.rel (!%p23_p10) target bundleno = 8 (0x8), region = 102 }
 0x156   :  { %539 = vsyncpa [#allocation3], 1 }
 0x157   :  { %541 = vsyncpa [#allocation3 + $0x1], 1 }
 0x158   :  { %542 = vsyncpa [#allocation4], 1 }
 0x159   :  { %544 = vsyncpa [#allocation4 + $0x1], 1 }
 0x15a   :  { %545 = vsyncpa [#allocation7], 1 }
 0x15b   :  { %547 = vsyncpa [#allocation7 + $0x1], 1 }

</bundles_post_ra>
